<compile_context>
chip_gen: v6e
topology: v6e:2x2x1
jax: 0.10.0
libtpu: 0.0.40
codegen_flags: <defaults>
</compile_context>

<pallas_src>
import jax
import jax.numpy as jnp
from jax import lax
from jax.experimental import pallas as pl
from jax.experimental.pallas import tpu as pltpu

EPS = 1e-5
USE_BF16 = True     # bf16 MXU operands (v6e/v7x native); accumulation stays f32


def _relu020(v):
    # The module's ReLU is Hardtanh(0, 20).
    return jnp.clip(v, 0.0, 20.0)


# ---------------------------------------------------------------------------
# pltpu.roll direction probe (robust across jax versions).
# We need shifted[m] == x[m + s]; dir = +1 means pltpu.roll matches jnp.roll
# (result[j] = x[j - shift]), dir = -1 means the opposite convention.
# ---------------------------------------------------------------------------
def _roll_direction():
    x = jnp.arange(8 * 128, dtype=jnp.int32).reshape(8, 128)

    def k(x_ref, o_ref):
        o_ref[...] = pltpu.roll(x_ref[...], 1, axis=1)

    y = jax.device_get(
        pl.pallas_call(k, out_shape=jax.ShapeDtypeStruct((8, 128), jnp.int32))(x))
    return 1 if int(y[0, 1]) == 0 else -1


def _vmem_capacity_bytes():
    # Per-generation VMEM (v5e/v6e: 128 MiB, v7x: 64 MiB per TC).
    try:
        info = pltpu.get_tpu_info()
        for attr in ("vmem_capacity_bytes", "vmem_size_bytes", "vmem_bytes"):
            v = getattr(info, attr, None)
            if v:
                return int(v)
    except Exception:
        pass
    return 64 * 1024 * 1024   # conservative default (v7x-sized)


# ---------------------------------------------------------------------------
# Pallas kernel
# ---------------------------------------------------------------------------
def make_block_kernel(H, W, B, Cin, width, scale, inter, Cout, has_sc,
                      dot_dtype, roll_dir):
    HW = H * W
    M = B * HW
    C1 = width * scale
    # bf16 taps only when width matches the bf16 sublane tile (16); otherwise
    # build taps in f32 and cast the whole im2col once (avoids re-packing).
    tap_in_dot = (dot_dtype != jnp.float32) and (width % 16 == 0)

    def kernel(*refs):
        it = iter(refs)
        x_ref = next(it)
        w_head_ref, b1_ref = next(it), next(it)
        bsc_ref = next(it) if has_sc else None
        wconv_ref, bconv_ref = next(it), next(it)
        if scale > 1:
            wa_ref, ba_ref, wb_ref, bb_ref = next(it), next(it), next(it), next(it)
        w3_ref, b3_ref = next(it), next(it)
        o_ref = next(it)

        x = x_ref[...]                                     # (Cin, M)
        x_d = x if x.dtype == dot_dtype else x.astype(dot_dtype)

        # conv1 and the 1x1 shortcut share one MXU pass over x.
        head = jnp.dot(w_head_ref[...], x_d, preferred_element_type=jnp.float32)
        out1 = _relu020(head[:C1, :] + b1_ref[...])        # (C1, M)
        if has_sc:
            res = head[C1:, :] + bsc_ref[...]              # (Cout, M) f32
        else:
            res = x.astype(jnp.float32)

        # 3x3 tap shifts + border masks.  Lane m encodes
        # (image, h, w) = (m // HW, (m % HW) // W, m % W); masks are computed
        # from m % HW so roll wrap-around never leaks pixels between the B
        # images packed in this block (invalid taps are always masked).
        lane = lax.broadcasted_iota(jnp.int32, (1, M), 1)
        pix = lane % HW
        hh, ww = pix // W, pix % W
        taps = []
        for dh in (-1, 0, 1):
            for dw in (-1, 0, 1):
                if dh == 0 and dw == 0:
                    taps.append((0, None))                 # center: always valid
                    continue
                valid = ((hh + dh >= 0) & (hh + dh < H) &
                         (ww + dw >= 0) & (ww + dw < W))
                shift = (roll_dir * -(dh * W + dw)) % M
                taps.append((shift, valid))

        def conv3x3(sp, i):
            # One im2col-style matmul: (width, 9*width) @ (9*width, M).
            src = sp.astype(dot_dtype) if tap_in_dot else sp
            zero = jnp.zeros((), src.dtype)
            cols = []
            for shift, valid in taps:
                if valid is None:
                    cols.append(src)                       # center tap: no mask
                else:
                    cols.append(jnp.where(valid, pltpu.roll(src, shift, axis=1),
                                          zero))
            im2col = jnp.concatenate(cols, axis=0)         # (9*width, M)
            if im2col.dtype != dot_dtype:
                im2col = im2col.astype(dot_dtype)
            return jnp.dot(wconv_ref[i], im2col,
                           preferred_element_type=jnp.float32)

        def aff(sp, spi, j):
            # xa = cat([sp, spi], channel); local_att; attention blend.
            xa = jnp.concatenate([sp, spi], axis=0).astype(dot_dtype)
            a1 = jnp.dot(wa_ref[j], xa, preferred_element_type=jnp.float32)
            a1 = a1 + ba_ref[j]                            # conv-bias + BN folded
            a1 = a1 * jax.nn.sigmoid(a1)                   # SiLU
            wb = wb_ref[j]                                 # (width, inter) f32
            if inter <= 8:
                # K = inter is tiny: rank-1 VPU FMAs, skip the MXU round-trip.
                a2 = bb_ref[j] + wb[:, 0:1] * a1[0:1, :]
                for t in range(1, inter):
                    a2 = a2 + wb[:, t:t + 1] * a1[t:t + 1, :]
            else:
                a2 = jnp.dot(wb.astype(dot_dtype), a1.astype(dot_dtype),
                             preferred_element_type=jnp.float32) + bb_ref[j]
            att = 1.0 + jnp.tanh(a2)
            return sp * att + spi * (2.0 - att)

        bconv = bconv_ref[...]                             # (scale*width, 1)
        parts = []
        sp = None
        for i in range(scale):
            spi = out1[i * width:(i + 1) * width, :]
            sp = spi if i == 0 else aff(sp, spi, i - 1)
            sp = conv3x3(sp, i)
            sp = _relu020(sp + bconv[i * width:(i + 1) * width, :])
            parts.append(sp)

        # conv3 (1x1) over the channel-concat of branches
        feat = jnp.concatenate(parts, axis=0).astype(dot_dtype)   # (C1, M)
        out3 = jnp.dot(w3_ref[...], feat, preferred_element_type=jnp.float32)
        out3 = out3 + b3_ref[...]

        o_ref[...] = _relu020(out3 + res)                  # residual add in f32

    return kernel


# ---------------------------------------------------------------------------
# Parameter construction (deterministic, synthetic)
# ---------------------------------------------------------------------------
def init_raw_params(key, in_planes, width, scale, inter, cout, has_sc):
    keys = iter(jax.random.split(key, 64))

    def wgt(shape, s=0.1):
        return jax.random.normal(next(keys), shape, jnp.float32) * s

    def bn(c):
        return dict(
            g=1.0 + 0.1 * jax.random.normal(next(keys), (c,), jnp.float32),
            b=0.1 * jax.random.normal(next(keys), (c,), jnp.float32),
            m=0.1 * jax.random.normal(next(keys), (c,), jnp.float32),
            v=0.5 + 0.3 * jnp.abs(jax.random.normal(next(keys), (c,), jnp.float32)),
        )

    p = {}
    p['conv1'] = wgt((width * scale, in_planes, 1, 1))
    p['bn1'] = bn(width * scale)
    p['convs'] = [wgt((width, width, 3, 3)) for _ in range(scale)]
    p['bns'] = [bn(width) for _ in range(scale)]
    p['affs'] = []
    for _ in range(scale - 1):
        p['affs'].append(dict(
            wa=wgt((inter, 2 * width, 1, 1)), ba=wgt((inter,)),
            bna=bn(inter),
            wb=wgt((width, inter, 1, 1)), bb=wgt((width,)),
            bnb=bn(width)))
    p['conv3'] = wgt((cout, width * scale, 1, 1))
    p['bn3'] = bn(cout)
    if has_sc:
        p['convsc'] = wgt((cout, in_planes, 1, 1))
        p['bnsc'] = bn(cout)
    return p


def _bn_fold(d, conv_bias=None):
    # BN (and optional preceding conv bias) folded into (scale, bias).
    s = d['g'] / jnp.sqrt(d['v'] + EPS)
    b = d['b'] - d['m'] * s
    if conv_bias is not None:
        b = b + conv_bias * s
    return s, b


def kernel_params_from_raw(p, Cin, width, scale, inter, Cout, has_sc, dot_dtype):
    C1 = width * scale
    f32 = jnp.float32
    params = []

    # conv1 (+ shortcut) merged, BN scale folded into the weight rows.
    s1, b1 = _bn_fold(p['bn1'])
    w1 = p['conv1'].reshape(C1, Cin) * s1[:, None]
    if has_sc:
        ssc, bsc = _bn_fold(p['bnsc'])
        wsc = p['convsc'].reshape(Cout, Cin) * ssc[:, None]
        w_head = jnp.concatenate([w1, wsc], axis=0)
    else:
        w_head = w1
    params.append(w_head.astype(dot_dtype))                       # w1sc
    params.append(b1[:, None].astype(f32))                        # b1
    if has_sc:
        params.append(bsc[:, None].astype(f32))                   # bsc

    # 3x3 convs: rows ordered (kh, kw, ci) to match the im2col tap order.
    wconv_rows, bconv_rows = [], []
    for i in range(scale):
        s, b = _bn_fold(p['bns'][i])
        w = jnp.transpose(p['convs'][i], (0, 2, 3, 1)).reshape(width, 9 * width)
        wconv_rows.append(w * s[:, None])
        bconv_rows.append(b)
    params.append(jnp.stack(wconv_rows, axis=0).astype(dot_dtype))        # (scale, width, 9w)
    params.append(jnp.concatenate(bconv_rows)[:, None].astype(f32))       # (scale*width, 1)

    if scale > 1:
        wa, ba, wb, bb = [], [], [], []
        for a in p['affs']:
            sa, ba_f = _bn_fold(a['bna'], a['ba'])
            sb, bb_f = _bn_fold(a['bnb'], a['bb'])
            wa.append(a['wa'].reshape(inter, 2 * width) * sa[:, None])
            ba.append(ba_f[:, None])
            wb.append(a['wb'].reshape(width, inter) * sb[:, None])
            bb.append(bb_f[:, None])
        params.append(jnp.stack(wa, 0).astype(dot_dtype))   # (scale-1, inter, 2w)
        params.append(jnp.stack(ba, 0).astype(f32))         # (scale-1, inter, 1)
        params.append(jnp.stack(wb, 0).astype(f32))         # (scale-1, width, inter) VPU
        params.append(jnp.stack(bb, 0).astype(f32))         # (scale-1, width, 1)

    s3, b3 = _bn_fold(p['bn3'])
    params.append((p['conv3'].reshape(Cout, C1) * s3[:, None]).astype(dot_dtype))
    params.append(b3[:, None].astype(f32))
    return params


# ---------------------------------------------------------------------------
# Wrapper around pallas_call
# ---------------------------------------------------------------------------
def run_block(x_nchw, params, width, scale, inter, Cout, stride, has_sc,
              dot_dtype, roll_dir):
    N, Cin, H, W = x_nchw.shape
    x = x_nchw.astype(jnp.float32)
    if stride != 1:
        # conv1 / shortcut are strided 1x1 convs == conv on subsampled input
        x = x[:, :, ::stride, ::stride]
        H, W = x.shape[2], x.shape[3]
    HW = H * W
    C1 = width * scale

    # When the shortcut is a conv, x only feeds matmuls -> ship it as bf16
    # (halves the input DMA bytes with no extra precision loss).
    x_in_dtype = dot_dtype if has_sc else jnp.float32
    x_cm = jnp.transpose(x, (1, 0, 2, 3)).reshape(Cin, N * HW).astype(x_in_dtype)

    # --- per-step image count B sized from a per-generation VMEM budget ----
    cap = _vmem_capacity_bytes()
    vmem_limit = max(32 * 1024 * 1024, min(int(cap * 0.75), 96 * 1024 * 1024))
    budget = vmem_limit // 2
    dot_sz = jnp.dtype(dot_dtype).itemsize
    x_sz = jnp.dtype(x_in_dtype).itemsize
    tap_sz = dot_sz if (dot_dtype != jnp.float32 and width % 16 == 0) else 4
    head_rows = C1 + (Cout if has_sc else 0)
    per_img = HW * (
        2 * Cin * x_sz                 # x block (double-buffered)
        + 2 * Cout * 4                 # output block (double-buffered)
        + head_rows * 4                # head matmul result
        + C1 * 4                       # out1
        + 2 * 9 * width * tap_sz       # im2col + tap columns
        + scale * width * 4            # branch outputs
        + C1 * dot_sz                  # feat (conv3 operand)
        + Cout * 4                     # residual / out3
        + 6 * width * 4)               # AFF temporaries
    b_budget = max(1, budget // max(1, per_img))
    # keep >= 2 grid steps (v7x has 2 TensorCores to feed)
    b_cap = max(1, min(b_budget, N if N == 1 else N // 2))
    B = max(d for d in range(1, b_cap + 1) if N % d == 0)
    steps = N // B

    kern = make_block_kernel(H, W, B, Cin, width, scale, inter, Cout, has_sc,
                             dot_dtype, roll_dir)

    def _const_map(ndim):
        zeros = (0,) * ndim
        return lambda n, _z=zeros: _z

    in_specs = [pl.BlockSpec((Cin, B * HW), lambda n: (0, n))]
    in_specs += [pl.BlockSpec(a.shape, _const_map(a.ndim)) for a in params]

    flops = 2 * N * HW * (
        Cin * head_rows + scale * 9 * width * width
        + (scale - 1) * (2 * width * inter + inter * width)
        + C1 * Cout)
    transcendentals = N * HW * (scale - 1) * (inter + width)
    bytes_accessed = int(x_cm.size) * x_sz + Cout * N * HW * 4 + sum(
        int(a.size) * a.dtype.itemsize for a in params)

    out_cm = pl.pallas_call(
        kern,
        out_shape=jax.ShapeDtypeStruct((Cout, N * HW), jnp.float32),
        grid=(steps,),
        in_specs=in_specs,
        out_specs=pl.BlockSpec((Cout, B * HW), lambda n: (0, n)),
        compiler_params=pltpu.CompilerParams(
            dimension_semantics=("parallel",),
            vmem_limit_bytes=vmem_limit),
        cost_estimate=pl.CostEstimate(flops=flops,
                                      transcendentals=transcendentals,
                                      bytes_accessed=bytes_accessed),
    )(x_cm, *params)

    out = out_cm.reshape(Cout, N, H, W)
    return jnp.transpose(out, (1, 0, 2, 3))          # back to NCHW


# ---------------------------------------------------------------------------
# Pure-JAX reference (f32, lax.conv) for correctness checking
# ---------------------------------------------------------------------------
def reference_forward(x_nhwc, p, width, scale, stride, has_sc):
    def bn(v, d):
        return (v - d['m']) / jnp.sqrt(d['v'] + EPS) * d['g'] + d['b']

    def conv(v, w_oihw, s=1, padding=((0, 0), (0, 0))):
        w = jnp.transpose(w_oihw, (2, 3, 1, 0))      # OIHW -> HWIO
        return lax.conv_general_dilated(v, w, (s, s), padding,
                                        dimension_numbers=('NHWC', 'HWIO', 'NHWC'),
                                        precision=lax.Precision.HIGHEST)

    out = _relu020(bn(conv(x_nhwc, p['conv1'], stride), p['bn1']))
    spx = [out[..., i * width:(i + 1) * width] for i in range(scale)]
    parts = []
    sp = None
    for i in range(scale):
        if i == 0:
            sp = spx[0]
        else:
            a = p['affs'][i - 1]
            xa = jnp.concatenate([sp, spx[i]], axis=-1)
            t = conv(xa, a['wa']) + a['ba']
            t = bn(t, a['bna'])
            t = t * jax.nn.sigmoid(t)
            t = conv(t, a['wb']) + a['bb']
            t = bn(t, a['bnb'])
            att = 1.0 + jnp.tanh(t)
            sp = sp * att + spx[i] * (2.0 - att)
        sp = conv(sp, p['convs'][i], 1, ((1, 1), (1, 1)))
        sp = _relu020(bn(sp, p['bns'][i]))
        parts.append(sp)
    out = jnp.concatenate(parts, axis=-1)
    out = bn(conv(out, p['conv3']), p['bn3'])
    res = bn(conv(x_nhwc, p['convsc'], stride), p['bnsc']) if has_sc else x_nhwc
    return _relu020(out + res)


# ---------------------------------------------------------------------------
if __name__ == "__main__":
    # Config: BasicBlockERes2NetV2_AFF(expansion=2, in_planes=16, planes=16,
    #                                  stride=1, base_width=32, scale=2)
    N, in_planes, H, W = 8, 16, 16, 16
    planes, expansion, stride, base_width, scale = 16, 2, 1, 32, 2
    width = (planes * base_width) // 64            # 8
    inter = max(1, width // 4)                     # AFF inter channels = 2
    cout = planes * expansion                      # 32
    has_sc = (stride != 1) or (in_planes != expansion * planes)   # True

    dot_dtype = jnp.bfloat16 if USE_BF16 else jnp.float32
    roll_dir = _roll_direction()

    key = jax.random.PRNGKey(0)
    kx, kp = jax.random.split(key)
    x_nchw = jax.random.normal(kx, (N, in_planes, H, W), jnp.float32)

    raw = init_raw_params(kp, in_planes, width, scale, inter, cout, has_sc)
    params = kernel_params_from_raw(raw, in_planes, width, scale, inter, cout,
                                    has_sc, dot_dtype)

    out = run_block(x_nchw, params, width, scale, inter, cout, stride, has_sc,
                    dot_dtype, roll_dir)
    out = jax.block_until_ready(out)

    # verify against the pure-JAX f32 reference
    x_nhwc = jnp.transpose(x_nchw, (0, 2, 3, 1))
    ref = jnp.transpose(
        reference_forward(x_nhwc, raw, width, scale, stride, has_sc),
        (0, 3, 1, 2))
    err = float(jnp.max(jnp.abs(out - ref)))
    tol = 5e-2 if USE_BF16 else 1e-4
    assert jnp.allclose(out, ref, atol=tol, rtol=tol), f"max abs err={err}"

    print("KERNEL_OK")
</pallas_src>

<mosaic_0001>
module attributes {stable_mosaic.version = 11 : i64} {
  func.func @k(%arg0: memref<8x128xi32, #tpu.memory_space<vmem>>, %arg1: memref<8x128xi32, #tpu.memory_space<vmem>>) attributes {dimension_semantics = [], scalar_prefetch = 0 : i64, scratch_operands = 0 : i64, tpu.core_type = #tpu.core_type<tc>} {
    %c0 = arith.constant 0 : index
    %c0_0 = arith.constant 0 : index
    %0 = vector.load %arg0[%c0, %c0_0] : memref<8x128xi32, #tpu.memory_space<vmem>>, vector<8x128xi32>
    %c1_i32 = arith.constant 1 : i32
    %1 = tpu.dynamic_rotate %0 by %c1_i32 dim 1 : vector<8x128xi32>, i32 -> vector<8x128xi32>
    %c0_1 = arith.constant 0 : index
    %c0_2 = arith.constant 0 : index
    %2 = vector.load %arg1[%c0_1, %c0_2] : memref<8x128xi32, #tpu.memory_space<vmem>>, vector<8x128xi32>
    tpu.vector_store %arg1[%c0_1, %c0_2], %1 {strides = array<i32>} : memref<8x128xi32, #tpu.memory_space<vmem>>, vector<8x128xi32>,
    return
  }
}

</mosaic_0001>

<bundles_post_ra>
// kernel: tpu_custom_call.1
= control target key start
LH: loop header
LB: loop body
LE: loop exit
PB: predicated region body
PF: predicated region fallthrough
CT: control target
= control target key end

     0   :  { %6 = vsyncpa [#allocation3], 0  ;;  %s106_s0 = inlined_call_operand.hbm [shape: s32[8,128], index: 0, kind: input, shape index: {}]   ;;  %s107_s1 = inlined_call_operand.hbm [shape: s32[8,128], index: 1, kind: output, shape index: {}]  }
   0x1   :  { %7 = vsyncpa [#allocation4], 0  ;;  %s87_s6 = smov [#allocation2]  }
   0x2   :  { %s14_s7 = sshll.u32 %s87_s6, 4  ;;  %s15_s7 = int_to_ptr.vmem [resolvable:$true] %s14_s7 }
   0x3   :  { %s51_s8 = scalar_lea.vmem %s15_s7, 128  ;;  %p56_p1 = scmp.lt.s32.totalorder %s15_s7, %s15_s7 }
   0x4   :  { %p52_p0 = scmp.ne.s32.totalorder %s15_s7, %s51_s8  ;;  %p57_p2 = scmp.lt.s32.totalorder %s51_s8, %s51_s8 }
   0x6   :  { %p58_p3 = por %p57_p2, %p56_p1 }
   0x8   :  { %p59_p4 = pnand %p58_p3, %p52_p0 }
   0xa   :  { %62 = shalt.err (!%p59_p4)
}
   0xb   :  { %17 = dma.hbm_to_vmem [thread:$0]  %s106_s0, 128, %s15_s7, [#allocation3]  }
   0xc   :  { %83 = dma.done.wait [#allocation3], 128  }
   0xd   :  { %84 = vsyncadd [#allocation3], 4294967168  ;;  %v21_v0 = vld [vmem:[#allocation2] sm:$0xff]  ;;  %s88_s11 = smov 1   ;;  %s89_s12 = smov [#allocation5]  }
   0xe   :  { %22 = vrot.lane.b32.xlu0 %v21_v0, %s88_s11  ;;  %s31_s13 = sshll.u32 %s89_s12, 4  ;;  %s32_s13 = int_to_ptr.vmem [resolvable:$true] %s31_s13 }
   0xf   :  { %s63_s14 = scalar_lea.vmem %s32_s13, 128  ;;  %p68_p6 = scmp.lt.s32.totalorder %s32_s13, %s32_s13 }
  0x10   :  { %p64_p5 = scmp.ne.s32.totalorder %s32_s13, %s63_s14  ;;  %p69_p7 = scmp.lt.s32.totalorder %s63_s14, %s63_s14 }
  0x12   :  { %p70_p8 = por %p69_p7, %p68_p6 }
  0x14   :  { %p71_p9 = pnand %p70_p8, %p64_p5 }
  0x80   :  { %v23_v1 = vpop.permute.xlu0 %22 }
  0x81   :  { %24 = vst [vmem:[#allocation5] sm:$0xff] %v23_v1 }
  0x82   :  { %74 = shalt.err (!%p71_p9)
}
  0x83   :  { %34 = dma.vmem_to_hbm [thread:$0]  %s32_s13, 128, %s107_s1, [#allocation4]  }
  0x84   :  { %85 = dma.done.wait [#allocation4], 128  }
  0x85   :  { %86 = vsyncadd [#allocation4], 4294967168 }
  0x86   :  { %38 = vsyncpa [#allocation3], 1 }
  0x87   :  { %39 = vsyncpa [#allocation4], 1 }

</bundles_post_ra>
